<compile_context>
chip_gen: v7x
topology: tpu7x:2x2x1
jax: 0.10.0
libtpu: 0.0.40
codegen_flags: <defaults>
</compile_context>

<pallas_src>
import functools

import jax
import jax.numpy as jnp
from jax.experimental import pallas as pl
from jax.experimental.pallas import tpu as pltpu


_DMA_TARGET = 1 << 20      # aim for >= ~1 MiB input DMA per grid step
_MAX_UNROLL = 32           # cap on batch elements unrolled inside one step


def _vmem_capacity_bytes():
    """Physical VMEM per TensorCore; conservative fallback if query fails."""
    try:
        return int(pltpu.get_tpu_info().vmem_capacity_bytes)
    except Exception:
        return 64 << 20    # v7x is the smallest current generation


def _vmem_limit(need_bytes, cap_bytes):
    """Scoped-VMEM limit: >= default 32 MiB, <= physical minus headroom."""
    return int(min(max(cap_bytes // 2, cap_bytes - (8 << 20)),
                   max(32 << 20, need_bytes + (4 << 20))))


def _pick_bb(b, per_elem_bytes, budget_bytes):
    """Batch elements per grid step for the fused single-pass path."""
    max_vmem = max(1, budget_bytes // (4 * per_elem_bytes))   # 2x-buffered in + out
    want = max(1, -(-_DMA_TARGET // per_elem_bytes))          # ceil-div to ~1 MiB
    bb = int(min(b, want, max_vmem, _MAX_UNROLL))
    while b % bb:
        bb -= 1
    # v7x has 2 TensorCores: prefer an even step count when the per-step DMA
    # stays comfortably large after splitting the group in two.
    if b // bb == 1 and b > 1:
        half = bb // 2
        while half > 0 and b % half:
            half -= 1
        if half > 0 and half * per_elem_bytes >= (512 << 10):
            bb = half
    return bb


# --------------------------------------------------------------------------
# Fused single-pass kernel: pool + MLP + rescale for a group of BB images.
# --------------------------------------------------------------------------
def _ca_fused_kernel(x_ref, w1_ref, b1_ref, w2_ref, b2_ref, out_ref, *, inv_hw):
    # x_ref/out_ref : (BB, C, HWp)  channels in sublanes, spatial in lanes
    # w1_ref (HID,C)  b1_ref (HID,1)  w2_ref (C,HID)  b2_ref (C,1)
    bb = x_ref.shape[0]
    for j in range(bb):                                  # static unroll (bb <= 32)
        xj = x_ref[j]                                    # (C, HWp) in I/O dtype
        xf = xj.astype(jnp.float32)                      # widen: f32 pool/MLP/rescale
        pooled = jnp.sum(xf, axis=-1, keepdims=True) * inv_hw        # (C, 1)
        # Tiny squeeze/excite mat-vecs (second-order cost; see perf notes).
        h = jnp.dot(w1_ref[...], pooled,
                    preferred_element_type=jnp.float32) + b1_ref[...]  # (HID, 1)
        h = jnp.maximum(h, 0.0)
        z = jnp.dot(w2_ref[...], h,
                    preferred_element_type=jnp.float32) + b2_ref[...]  # (C, 1)
        attn = 1.0 / (1.0 + jnp.exp(-z))                               # sigmoid
        out_ref[j] = (xf * attn).astype(out_ref.dtype)   # lane-broadcast rescale


# --------------------------------------------------------------------------
# HW-tiled two-phase fallback (used when one image's block exceeds the budget).
# --------------------------------------------------------------------------
def _ca_pool_kernel(x_ref, sum_ref):
    # x_ref : (B, C, THW) one spatial tile of every batch element
    # sum_ref: (B, C, 1) f32 accumulator, resident across the HW-tile grid axis
    @pl.when(pl.program_id(0) == 0)
    def _():
        sum_ref[...] = jnp.zeros_like(sum_ref)
    sum_ref[...] += jnp.sum(x_ref[...].astype(jnp.float32), axis=-1, keepdims=True)


def _ca_rescale_kernel(pooled_ref, w1_ref, b1_ref, w2_ref, b2_ref,
                       x_ref, out_ref, *, inv_hw):
    # pooled_ref: (1, C, 1) per-channel sums of batch element program_id(0)
    # x_ref/out_ref: (1, C, THW) one spatial tile of that element
    pooled = pooled_ref[0] * inv_hw                                   # (C, 1) f32
    h = jnp.maximum(jnp.dot(w1_ref[...], pooled,
                            preferred_element_type=jnp.float32) + b1_ref[...], 0.0)
    z = jnp.dot(w2_ref[...], h,
                preferred_element_type=jnp.float32) + b2_ref[...]
    attn = 1.0 / (1.0 + jnp.exp(-z))                                   # (C, 1)
    xf = x_ref[0].astype(jnp.float32)
    out_ref[0] = (xf * attn).astype(out_ref.dtype)


# --------------------------------------------------------------------------
# Wrapper
# --------------------------------------------------------------------------
def _ca_forward(x, w1, b1, w2, b2, *, force_hw_tiling=False, hw_tile=None):
    """Channel attention forward.  x: (B, C, H, W) -> (B, C, H, W)."""
    b, c, h, w = x.shape
    hw = h * w
    itemsize = jnp.dtype(x.dtype).itemsize
    hid = w1.shape[0]

    w1m = w1.reshape(hid, c)        # 1x1-conv weights as 2-D matrices
    w2m = w2.reshape(c, hid)
    b1m = b1.reshape(hid, 1)        # biases as column vectors (lane-broadcast)
    b2m = b2.reshape(c, 1)

    cap = _vmem_capacity_bytes()
    budget = int(min(cap * 5 // 8, 80 << 20))       # live-block budget w/ headroom
    hw_pad = -(-hw // 128) * 128                    # lane-dense last dim
    inv_hw = 1.0 / float(hw)                        # mean over the TRUE H*W

    x2 = x.reshape(b, c, hw)                        # pure view, no HBM pass

    per_elem = c * hw_pad * itemsize
    use_fused = (not force_hw_tiling) and (4 * per_elem <= budget)

    if use_fused:
        if hw_pad != hw:
            x2 = jnp.pad(x2, ((0, 0), (0, 0), (0, hw_pad - hw)))
        bb = _pick_bb(b, per_elem, budget)
        need = 4 * bb * per_elem
        out = pl.pallas_call(
            functools.partial(_ca_fused_kernel, inv_hw=inv_hw),
            out_shape=jax.ShapeDtypeStruct((b, c, hw_pad), x.dtype),
            grid_spec=pltpu.PrefetchScalarGridSpec(
                num_scalar_prefetch=0,
                grid=(b // bb,),
                in_specs=[
                    pl.BlockSpec((bb, c, hw_pad), lambda i: (i, 0, 0)),
                    pl.BlockSpec(w1m.shape, lambda i: (0, 0)),
                    pl.BlockSpec(b1m.shape, lambda i: (0, 0)),
                    pl.BlockSpec(w2m.shape, lambda i: (0, 0)),
                    pl.BlockSpec(b2m.shape, lambda i: (0, 0)),
                ],
                out_specs=pl.BlockSpec((bb, c, hw_pad), lambda i: (i, 0, 0)),
            ),
            compiler_params=pltpu.CompilerParams(
                dimension_semantics=("parallel",),
                vmem_limit_bytes=_vmem_limit(need, cap)),
        )(x2, w1m, b1m, w2m, b2m)
    else:
        # ---- two-phase HW-tiled path ------------------------------------
        thw = (budget // (3 * b * c * itemsize)) // 128 * 128
        thw = int(max(128, min(thw, hw_pad)))
        if hw_tile is not None:
            thw = int(hw_tile)
        # TODO(synk): for very large B*C even a 128-lane tile may exceed the
        # budget in phase 1; that regime would additionally need batch tiling.
        n_t = -(-hw // thw)
        hw_tiled = n_t * thw
        if hw_tiled != hw:
            x2 = jnp.pad(x2, ((0, 0), (0, 0), (0, hw_tiled - hw)))

        pooled = pl.pallas_call(
            _ca_pool_kernel,
            out_shape=jax.ShapeDtypeStruct((b, c, 1), jnp.float32),
            grid_spec=pltpu.PrefetchScalarGridSpec(
                num_scalar_prefetch=0,
                grid=(n_t,),
                in_specs=[pl.BlockSpec((b, c, thw), lambda k: (0, 0, k))],
                out_specs=pl.BlockSpec((b, c, 1), lambda k: (0, 0, 0)),
            ),
            compiler_params=pltpu.CompilerParams(
                dimension_semantics=("arbitrary",),
                vmem_limit_bytes=_vmem_limit(3 * b * c * thw * itemsize, cap)),
        )(x2)

        out = pl.pallas_call(
            functools.partial(_ca_rescale_kernel, inv_hw=inv_hw),
            out_shape=jax.ShapeDtypeStruct((b, c, hw_tiled), x.dtype),
            grid_spec=pltpu.PrefetchScalarGridSpec(
                num_scalar_prefetch=0,
                grid=(b, n_t),
                in_specs=[
                    pl.BlockSpec((1, c, 1), lambda i, k: (i, 0, 0)),
                    pl.BlockSpec(w1m.shape, lambda i, k: (0, 0)),
                    pl.BlockSpec(b1m.shape, lambda i, k: (0, 0)),
                    pl.BlockSpec(w2m.shape, lambda i, k: (0, 0)),
                    pl.BlockSpec(b2m.shape, lambda i, k: (0, 0)),
                    pl.BlockSpec((1, c, thw), lambda i, k: (i, 0, k)),
                ],
                out_specs=pl.BlockSpec((1, c, thw), lambda i, k: (i, 0, k)),
            ),
            compiler_params=pltpu.CompilerParams(
                dimension_semantics=("parallel", "parallel"),
                vmem_limit_bytes=_vmem_limit(4 * c * thw * itemsize, cap)),
        )(pooled, w1m, b1m, w2m, b2m, x2)
        hw_pad = hw_tiled

    if hw_pad != hw:
        out = out[:, :, :hw]
    return out.reshape(b, c, h, w)


ca_forward = jax.jit(_ca_forward, static_argnames=("force_hw_tiling", "hw_tile"))


def ca_reference(x, w1, b1, w2, b2):
    """Pure-JAX/XLA reference for correctness checking."""
    y = jnp.mean(x, axis=(2, 3), keepdims=True)
    y = jnp.einsum("oc,bcij->boij", w1, y) + b1.reshape(1, -1, 1, 1)
    y = jnp.maximum(y, 0.0)
    y = jnp.einsum("oc,bcij->boij", w2, y) + b2.reshape(1, -1, 1, 1)
    y = jax.nn.sigmoid(y)
    return x * y


if __name__ == "__main__":
    # Module config: ca_layer(channel=32, reduction=8, bias=True)
    B, C, RED = 2, 32, 8
    HID = C // RED

    key = jax.random.PRNGKey(0)
    k_x, k1, k2, k3, k4, k_x2 = jax.random.split(key, 6)

    w1 = 0.2 * jax.random.normal(k1, (HID, C), jnp.float32)   # conv_du[0].weight
    b1 = 0.1 * jax.random.normal(k2, (HID, 1), jnp.float32)   # conv_du[0].bias
    w2 = 0.2 * jax.random.normal(k3, (C, HID), jnp.float32)   # conv_du[2].weight
    b2 = 0.1 * jax.random.normal(k4, (C, 1), jnp.float32)     # conv_du[2].bias

    # 1) fused single-pass path (H*W already a multiple of 128)
    x = jax.random.normal(k_x, (B, C, 16, 16), jnp.float32)
    out = jax.block_until_ready(ca_forward(x, w1, b1, w2, b2))
    ref = jax.block_until_ready(ca_reference(x, w1, b1, w2, b2))
    assert out.shape == x.shape, out.shape
    err = float(jnp.max(jnp.abs(out - ref)))
    assert err < 1e-4, f"fused path max abs error: {err}"

    # 2) fused path with lane padding (H*W = 100 -> padded to 128)
    xp = jax.random.normal(k_x2, (B, C, 10, 10), jnp.float32)
    outp = jax.block_until_ready(ca_forward(xp, w1, b1, w2, b2))
    refp = jax.block_until_ready(ca_reference(xp, w1, b1, w2, b2))
    assert outp.shape == xp.shape, outp.shape
    errp = float(jnp.max(jnp.abs(outp - refp)))
    assert errp < 1e-4, f"padded fused path max abs error: {errp}"

    # 3) HW-tiled two-phase fallback (forced small tile to exercise the path)
    outt = jax.block_until_ready(
        ca_forward(x, w1, b1, w2, b2, force_hw_tiling=True, hw_tile=128))
    errt = float(jnp.max(jnp.abs(outt - ref)))
    assert outt.shape == x.shape, outt.shape
    assert errt < 1e-4, f"tiled path max abs error: {errt}"

    print("KERNEL_OK")
</pallas_src>

<mosaic_0001>
module attributes {stable_mosaic.version = 11 : i64} {
  func.func @_ca_fused_kernel(%arg0: i32, %arg1: memref<2x32x256xf32, #tpu.memory_space<vmem>>, %arg2: memref<4x32xf32, #tpu.memory_space<vmem>>, %arg3: memref<4x1xf32, #tpu.memory_space<vmem>>, %arg4: memref<32x4xf32, #tpu.memory_space<vmem>>, %arg5: memref<32x1xf32, #tpu.memory_space<vmem>>, %arg6: memref<2x32x256xf32, #tpu.memory_space<vmem>>) attributes {dimension_semantics = [#tpu.dimension_semantics<parallel>], iteration_bounds = array<i64: 1>, scalar_prefetch = 0 : i64, scratch_operands = 0 : i64, tpu.core_type = #tpu.core_type<tc>, window_params = [{transform_indices = @transform_0, window_bounds = array<i64: 2, 32, 256>}, {pipeline_mode = #tpu.pipeline_mode<synchronous>, transform_indices = @transform_1, window_bounds = array<i64: 4, 32>}, {pipeline_mode = #tpu.pipeline_mode<synchronous>, transform_indices = @transform_2, window_bounds = array<i64: 4, 1>}, {pipeline_mode = #tpu.pipeline_mode<synchronous>, transform_indices = @transform_3, window_bounds = array<i64: 32, 4>}, {pipeline_mode = #tpu.pipeline_mode<synchronous>, transform_indices = @transform_4, window_bounds = array<i64: 32, 1>}, {transform_indices = @transform_5, window_bounds = array<i64: 2, 32, 256>}]} {
    %c0 = arith.constant 0 : index
    %c0_0 = arith.constant 0 : index
    %c0_1 = arith.constant 0 : index
    %0 = vector.load %arg1[%c0, %c0_0, %c0_1] : memref<2x32x256xf32, #tpu.memory_space<vmem>>, vector<1x32x256xf32>
    %1 = vector.shape_cast %0 : vector<1x32x256xf32> to vector<32x256xf32>
    %cst = arith.constant dense<0.000000e+00> : vector<32xf32>
    %2 = vector.multi_reduction <add>, %1, %cst [1] : vector<32x256xf32> to vector<32xf32>
    %3 = vector.shape_cast %2 : vector<32xf32> to vector<32x1xf32>
    %cst_2 = arith.constant 3.906250e-03 : f32
    %4 = vector.broadcast %cst_2 : f32 to vector<32x1xf32>
    %5 = arith.mulf %3, %4 : vector<32x1xf32>
    %c0_3 = arith.constant 0 : index
    %c0_4 = arith.constant 0 : index
    %6 = vector.load %arg2[%c0_3, %c0_4] : memref<4x32xf32, #tpu.memory_space<vmem>>, vector<4x32xf32>
    %cst_5 = arith.constant dense<0.000000e+00> : vector<4x1xf32>
    %7 = tpu.matmul %6, %5, %cst_5 {dimension_numbers = #tpu.dot_dimension_numbers<[1], [0], [0], [1], [0, 0, 1, 1], [], []>} : vector<4x32xf32>, vector<32x1xf32>, vector<4x1xf32> -> vector<4x1xf32>
    %c0_6 = arith.constant 0 : index
    %c0_7 = arith.constant 0 : index
    %8 = vector.load %arg3[%c0_6, %c0_7] : memref<4x1xf32, #tpu.memory_space<vmem>>, vector<4x1xf32>
    %9 = arith.addf %7, %8 : vector<4x1xf32>
    %cst_8 = arith.constant 0.000000e+00 : f32
    %10 = vector.broadcast %cst_8 : f32 to vector<4x1xf32>
    %11 = arith.maximumf %9, %10 : vector<4x1xf32>
    %c0_9 = arith.constant 0 : index
    %c0_10 = arith.constant 0 : index
    %12 = vector.load %arg4[%c0_9, %c0_10] : memref<32x4xf32, #tpu.memory_space<vmem>>, vector<32x4xf32>
    %cst_11 = arith.constant dense<0.000000e+00> : vector<32x1xf32>
    %13 = tpu.matmul %12, %11, %cst_11 {dimension_numbers = #tpu.dot_dimension_numbers<[1], [0], [0], [1], [0, 0, 1, 1], [], []>} : vector<32x4xf32>, vector<4x1xf32>, vector<32x1xf32> -> vector<32x1xf32>
    %c0_12 = arith.constant 0 : index
    %c0_13 = arith.constant 0 : index
    %14 = vector.load %arg5[%c0_12, %c0_13] : memref<32x1xf32, #tpu.memory_space<vmem>>, vector<32x1xf32>
    %15 = arith.addf %13, %14 : vector<32x1xf32>
    %cst_14 = arith.constant 0.000000e+00 : f32
    %16 = vector.broadcast %cst_14 : f32 to vector<32x1xf32>
    %17 = arith.subf %16, %15 : vector<32x1xf32>
    %18 = math.exp %17 : vector<32x1xf32>
    %cst_15 = arith.constant 1.000000e+00 : f32
    %19 = vector.broadcast %cst_15 : f32 to vector<32x1xf32>
    %20 = arith.addf %19, %18 : vector<32x1xf32>
    %cst_16 = arith.constant 1.000000e+00 : f32
    %21 = vector.broadcast %cst_16 : f32 to vector<32x1xf32>
    %22 = arith.divf %21, %20 : vector<32x1xf32>
    %23 = vector.broadcast %22 : vector<32x1xf32> to vector<32x256xf32>
    %24 = arith.mulf %1, %23 : vector<32x256xf32>
    %c0_17 = arith.constant 0 : index
    %c0_18 = arith.constant 0 : index
    %c0_19 = arith.constant 0 : index
    %25 = vector.load %arg6[%c0_17, %c0_18, %c0_19] : memref<2x32x256xf32, #tpu.memory_space<vmem>>, vector<1x32x256xf32>
    %26 = vector.shape_cast %25 : vector<1x32x256xf32> to vector<32x256xf32>
    %27 = vector.shape_cast %24 : vector<32x256xf32> to vector<1x32x256xf32>
    tpu.vector_store %arg6[%c0_17, %c0_18, %c0_19], %27 {strides = array<i32>} : memref<2x32x256xf32, #tpu.memory_space<vmem>>, vector<1x32x256xf32>,
    %c1 = arith.constant 1 : index
    %c0_20 = arith.constant 0 : index
    %c0_21 = arith.constant 0 : index
    %28 = vector.load %arg1[%c1, %c0_20, %c0_21] : memref<2x32x256xf32, #tpu.memory_space<vmem>>, vector<1x32x256xf32>
    %29 = vector.shape_cast %28 : vector<1x32x256xf32> to vector<32x256xf32>
    %cst_22 = arith.constant dense<0.000000e+00> : vector<32xf32>
    %30 = vector.multi_reduction <add>, %29, %cst_22 [1] : vector<32x256xf32> to vector<32xf32>
    %31 = vector.shape_cast %30 : vector<32xf32> to vector<32x1xf32>
    %cst_23 = arith.constant 3.906250e-03 : f32
    %32 = vector.broadcast %cst_23 : f32 to vector<32x1xf32>
    %33 = arith.mulf %31, %32 : vector<32x1xf32>
    %c0_24 = arith.constant 0 : index
    %c0_25 = arith.constant 0 : index
    %34 = vector.load %arg2[%c0_24, %c0_25] : memref<4x32xf32, #tpu.memory_space<vmem>>, vector<4x32xf32>
    %cst_26 = arith.constant dense<0.000000e+00> : vector<4x1xf32>
    %35 = tpu.matmul %34, %33, %cst_26 {dimension_numbers = #tpu.dot_dimension_numbers<[1], [0], [0], [1], [0, 0, 1, 1], [], []>} : vector<4x32xf32>, vector<32x1xf32>, vector<4x1xf32> -> vector<4x1xf32>
    %c0_27 = arith.constant 0 : index
    %c0_28 = arith.constant 0 : index
    %36 = vector.load %arg3[%c0_27, %c0_28] : memref<4x1xf32, #tpu.memory_space<vmem>>, vector<4x1xf32>
    %37 = arith.addf %35, %36 : vector<4x1xf32>
    %cst_29 = arith.constant 0.000000e+00 : f32
    %38 = vector.broadcast %cst_29 : f32 to vector<4x1xf32>
    %39 = arith.maximumf %37, %38 : vector<4x1xf32>
    %c0_30 = arith.constant 0 : index
    %c0_31 = arith.constant 0 : index
    %40 = vector.load %arg4[%c0_30, %c0_31] : memref<32x4xf32, #tpu.memory_space<vmem>>, vector<32x4xf32>
    %cst_32 = arith.constant dense<0.000000e+00> : vector<32x1xf32>
    %41 = tpu.matmul %40, %39, %cst_32 {dimension_numbers = #tpu.dot_dimension_numbers<[1], [0], [0], [1], [0, 0, 1, 1], [], []>} : vector<32x4xf32>, vector<4x1xf32>, vector<32x1xf32> -> vector<32x1xf32>
    %c0_33 = arith.constant 0 : index
    %c0_34 = arith.constant 0 : index
    %42 = vector.load %arg5[%c0_33, %c0_34] : memref<32x1xf32, #tpu.memory_space<vmem>>, vector<32x1xf32>
    %43 = arith.addf %41, %42 : vector<32x1xf32>
    %cst_35 = arith.constant 0.000000e+00 : f32
    %44 = vector.broadcast %cst_35 : f32 to vector<32x1xf32>
    %45 = arith.subf %44, %43 : vector<32x1xf32>
    %46 = math.exp %45 : vector<32x1xf32>
    %cst_36 = arith.constant 1.000000e+00 : f32
    %47 = vector.broadcast %cst_36 : f32 to vector<32x1xf32>
    %48 = arith.addf %47, %46 : vector<32x1xf32>
    %cst_37 = arith.constant 1.000000e+00 : f32
    %49 = vector.broadcast %cst_37 : f32 to vector<32x1xf32>
    %50 = arith.divf %49, %48 : vector<32x1xf32>
    %51 = vector.broadcast %50 : vector<32x1xf32> to vector<32x256xf32>
    %52 = arith.mulf %29, %51 : vector<32x256xf32>
    %c1_38 = arith.constant 1 : index
    %c0_39 = arith.constant 0 : index
    %c0_40 = arith.constant 0 : index
    %53 = vector.load %arg6[%c1_38, %c0_39, %c0_40] : memref<2x32x256xf32, #tpu.memory_space<vmem>>, vector<1x32x256xf32>
    %54 = vector.shape_cast %53 : vector<1x32x256xf32> to vector<32x256xf32>
    %55 = vector.shape_cast %52 : vector<32x256xf32> to vector<1x32x256xf32>
    tpu.vector_store %arg6[%c1_38, %c0_39, %c0_40], %55 {strides = array<i32>} : memref<2x32x256xf32, #tpu.memory_space<vmem>>, vector<1x32x256xf32>,
    return
  }
  func.func @transform_0(%arg0: i32) -> (i32, i32, i32) {
    %c0_i32 = arith.constant 0 : i32
    %c0_i32_0 = arith.constant 0 : i32
    %c0_i32_1 = arith.constant 0 : i32
    return %arg0, %c0_i32, %c0_i32_0 : i32, i32, i32
  }
  func.func @transform_1(%arg0: i32) -> (i32, i32) {
    %c0_i32 = arith.constant 0 : i32
    %c0_i32_0 = arith.constant 0 : i32
    %c0_i32_1 = arith.constant 0 : i32
    return %c0_i32, %c0_i32_0 : i32, i32
  }
  func.func @transform_2(%arg0: i32) -> (i32, i32) {
    %c0_i32 = arith.constant 0 : i32
    %c0_i32_0 = arith.constant 0 : i32
    %c0_i32_1 = arith.constant 0 : i32
    return %c0_i32, %c0_i32_0 : i32, i32
  }
  func.func @transform_3(%arg0: i32) -> (i32, i32) {
    %c0_i32 = arith.constant 0 : i32
    %c0_i32_0 = arith.constant 0 : i32
    %c0_i32_1 = arith.constant 0 : i32
    return %c0_i32, %c0_i32_0 : i32, i32
  }
  func.func @transform_4(%arg0: i32) -> (i32, i32) {
    %c0_i32 = arith.constant 0 : i32
    %c0_i32_0 = arith.constant 0 : i32
    %c0_i32_1 = arith.constant 0 : i32
    return %c0_i32, %c0_i32_0 : i32, i32
  }
  func.func @transform_5(%arg0: i32) -> (i32, i32, i32) {
    %c0_i32 = arith.constant 0 : i32
    %c0_i32_0 = arith.constant 0 : i32
    %c0_i32_1 = arith.constant 0 : i32
    return %arg0, %c0_i32, %c0_i32_0 : i32, i32, i32
  }
}

</mosaic_0001>

<bundles_post_ra>
// kernel: _ca_forward.1
= control target key start
LH: loop header
LB: loop body
LE: loop exit
PB: predicated region body
PF: predicated region fallthrough
CT: control target
= control target key end

     0   :  { %v703_v12 = vmov 0.0|0.0   ;;  %vm704_vm0 = vmmov 0   ;;  %v705_v13 = vmov 0.0   ;;  %vm46_vm1 = vcmask 261120   ;;  %s973_s0 = inlined_call_operand.vmem [shape: f32[2,32,256], index: 0, kind: input, shape index: {}]   ;;  %s974_s1 = inlined_call_operand.vmem [shape: f32[4,32], index: 1, kind: input, shape index: {}]   ;;  %s975_s3 = inlined_call_operand.vmem [shape: f32[32,4], index: 3, kind: input, shape index: {}]   ;;  %s976_s2 = inlined_call_operand.vmem [shape: f32[4,1], index: 2, kind: input, shape index: {}]   ;;  %s977_s4 = inlined_call_operand.vmem [shape: f32[32,1], index: 4, kind: input, shape index: {}]   ;;  %s978_s5 = inlined_call_operand.vmem [shape: f32[2,32,256], index: 5, kind: output, shape index: {}]  }
   0x1   :  { %v740_v0 = vld [vmem:[%s973_s0 + $0x20] sm:$0xff]  ;;  %v745_v1 = vld [vmem:[%s973_s0 + $0x28] sm:$0xff]  ;;  %v762_v5 = vld [vmem:[%s973_s0 + $0x30] sm:$0xff]  ;;  %651 = vmatprep.subr.bf16.mxu0 %v703_v12  ;;  %621 = vmatprep.mubr.msk.f32.mxu0 %vm704_vm0, %v705_v13  ;;  %vm129_vm2 = vcmask 31744   ;;  %vm142_vm3 = vcmask 1043456   ;;  %v706_v57 = vmov 0  }
   0x2   :  { %v750_v2 = vld [vmem:[%s973_s0] sm:$0xff]  ;;  %v34_v3 = vadd.f32 %v745_v1, %v740_v0  ;;  %v757_v4 = vld [vmem:[%s973_s0 + $0x8] sm:$0xff]  ;;  %v767_v6 = vld [vmem:[%s973_s0 + $0x38] sm:$0xff]  ;;  %670 = vset.pattern.permute.xlu1 %v706_v57  ;;  %669 = vset.pattern.permute.xlu0 %v706_v57 }
   0x3   :  { %v28_v7 = vadd.f32 %v757_v4, %v750_v2  ;;  %v774_v8 = vld [vmem:[%s973_s0 + $0x10] sm:$0xff]  ;;  %v779_v9 = vld [vmem:[%s973_s0 + $0x18] sm:$0xff]  ;;  %v37_v10 = vadd.f32 %v767_v6, %v762_v5  ;;  %v803_v17 = vld [vmem:[%s973_s0 + $0x40] sm:$0xff] }
   0x4   :  { %35 = vadd.xlane.f32.xlu1 %v34_v3  ;;  %v31_v11 = vadd.f32 %v779_v9, %v774_v8  ;;  %v791_v14 = vld [vmem:[%s973_s0 + $0x50] sm:$0xff]  ;;  %v796_v15 = vld [vmem:[%s973_s0 + $0x58] sm:$0xff]  ;;  %v808_v18 = vld [vmem:[%s973_s0 + $0x48] sm:$0xff] }
   0x5   :  { %29 = vadd.xlane.f32.xlu0 %v28_v7  ;;  %v303_v16 = vadd.f32 %v796_v15, %v791_v14  ;;  %v813_v19 = vld [vmem:[%s973_s0 + $0x70] sm:$0xff]  ;;  %v300_v20 = vadd.f32 %v808_v18, %v803_v17  ;;  %v820_v21 = vld [vmem:[%s973_s0 + $0x78] sm:$0xff]  ;;  %v825_v22 = vld [vmem:[%s973_s0 + $0x60] sm:$0xff] }
   0x6   :  { %v830_v23 = vld [vmem:[%s973_s0 + $0x68] sm:$0xff]  ;;  %v309_v24 = vadd.f32 %v820_v21, %v813_v19  ;;  %v44_v36 = vld [vmem:[%s974_s1] sm:$0xf]  ;;  %v123_v53 = vld [vmem:[%s975_s3 + $0x10] sm:$0xff] }
   0x7   :  { %v306_v25 = vadd.f32 %v830_v23, %v825_v22  ;;  %v121_v37 = vld [vmem:[%s975_s3] sm:$0xff]  ;;  %v122_v51 = vld [vmem:[%s975_s3 + $0x8] sm:$0xff]  ;;  %v124_v55 = vld [vmem:[%s975_s3 + $0x18] sm:$0xff] }
   0x8   :  { %38 = vadd.xlane.f32.xlu1 %v37_v10  ;;  %626 = vmatprep.mubr.msk.f32.mxu1 %vm129_vm2, %v121_v37  ;;  %v45_v40 = vld [vmem:[%s976_s2] sm:$0xf]  ;;  %v875_v58 = vld [vmem:[%s977_s4 + $0x8] sm:$0xff]  ;;  %v887_v3 = vld [vmem:[%s977_s4 + $0x18] sm:$0xff] }
   0x9   :  { %32 = vadd.xlane.f32.xlu0 %v31_v11  ;;  %v316_v56 = vld [vmem:[%s974_s1] sm:$0xf]  ;;  %v892_v10 = vld [vmem:[%s977_s4 + $0x10] sm:$0xff] }
   0xa   :  { %v880_v59 = vld [vmem:[%s977_s4] sm:$0xff] }
   0xc   :  { %304 = vadd.xlane.f32.xlu1 %v303_v16 }
   0xd   :  { %301 = vadd.xlane.f32.xlu0 %v300_v20 }
  0x10   :  { %310 = vadd.xlane.f32.xlu1 %v309_v24 }
  0x11   :  { %307 = vadd.xlane.f32.xlu0 %v306_v25 }
  0x91   :  { %v36_v26 = vpop.xlane.xlu1 %35 }
  0x92   :  { %v30_v27 = vpop.xlane.xlu0 %29  ;;  %v42_v32 = vmul.f32 0.00390625, %v36_v26  ;;  %v317_v26 = vld [vmem:[%s976_s2] sm:$0xf] }
  0x93   :  { %v40_v30 = vmul.f32 0.00390625, %v30_v27 }
  0x95   :  { %v39_v28 = vpop.xlane.xlu1 %38 }
  0x96   :  { %v33_v29 = vpop.xlane.xlu0 %32  ;;  %v43_v33 = vmul.f32 0.00390625, %v39_v28 }
  0x97   :  { %v41_v31 = vmul.f32 0.00390625, %v33_v29 }
  0x98   :  { %v655_v35 = vpack.c.bf16 %v43_v33, %v42_v32 }
  0x99   :  { %v652_v34 = vpack.c.bf16 %v41_v31, %v40_v30  ;;  %v305_v38 = vpop.xlane.xlu1 %304 }
  0x9a   :  { %v302_v39 = vpop.xlane.xlu0 %301  ;;  %v313_v42 = vmul.f32 0.00390625, %v305_v38 }
  0x9b   :  { %653 = vmatpush3.bf16.msra.mxu0 %v652_v34  ;;  %v312_v43 = vmul.f32 0.00390625, %v302_v39 }
  0x9c   :  { %654 = vmatprep.subr.bf16.mxu0 %v703_v12 }
  0x9d   :  { %v311_v44 = vpop.xlane.xlu1 %310  ;;  %v658_v49 = vpack.c.bf16 %v313_v42, %v312_v43 }
  0x9e   :  { %v308_v47 = vpop.xlane.xlu0 %307  ;;  %v315_v50 = vmul.f32 0.00390625, %v311_v44 }
  0x9f   :  { %656 = vmatpush3.bf16.msra.mxu0 %v655_v35  ;;  %v314_v52 = vmul.f32 0.00390625, %v308_v47 }
  0xa1   :  { %v661_v54 = vpack.c.bf16 %v315_v50, %v314_v52 }
  0xa2   :  { %622 = vmatmul.mubr.msk.f32.vlgmr.msra.gmra.mrb[0].mxu0 %vm46_vm1, %v44_v36 }
  0xa3   :  { %645 = vmatprep.mubr.msk.f32.mxu0 %vm129_vm2, %v121_v37 }
 0x175   :  { %v116_v41 = vpop.f32.mrb[0].mxu0 }
 0x176   :  { %v117_v45 = vadd.f32 %v116_v41, %v45_v40  ;;  %v623_v46 = vpop.f32.mrb[1].mxu0 }
 0x178   :  { %v120_v48 = vmax.f32 %v117_v45, 0.0 }
 0x17a   :  { %624 = vmatprep.subr.msk.mxu1 %vm142_vm3, %v120_v48 }
 0x17b   :  { %625 = vmatpush3.msk.msra.mxu1 %vm142_vm3, %v120_v48 }
 0x17c   :  { %627 = vmatmul.mubr.msk.f32.vlgmr.msra.gmra.mrb[0].mxu1 %vm129_vm2, %v122_v51  ;;  %657 = vmatprep.subr.bf16.mxu1 %v703_v12 }
 0x17d   :  { %659 = vmatpush3.bf16.msra.mxu1 %v658_v49  ;;  %629 = vmatprep.mubr.msk.f32.mxu1 %vm129_vm2, %v123_v53 }
 0x17e   :  { %660 = vmatprep.subr.bf16.mxu1 %v703_v12 }
 0x180   :  { %630 = vmatmul.mubr.msk.f32.gmra.mrb[2].mxu1 %vm129_vm2, %v124_v55 }
 0x181   :  { %662 = vmatpush3.bf16.msra.mxu1 %v661_v54  ;;  %640 = vmatprep.mubr.msk.f32.mxu1 %vm704_vm0, %v705_v13 }
 0x184   :  { %641 = vmatmul.mubr.msk.f32.vlgmr.msra.gmra.mrb[4].mxu1 %vm46_vm1, %v316_v56 }
 0x185   :  { %648 = vmatprep.mubr.msk.f32.mxu1 %vm129_vm2, %v123_v53 }
 0x24f   :  { %v628_v60 = vpop.f32.mrb[0].mxu1 }
 0x250   :  { %v218_v61 = vadd.f32 %v628_v60, %v875_v58  ;;  %v212_v62 = vpop.f32.mrb[1].mxu1 }
 0x251   :  { %v213_v63 = vadd.f32 %v212_v62, %v880_v59 }
 0x252   :  { %v232_v7 = vsub.f32 0.0, %v218_v61 }
 0x253   :  { %v231_v11 = vsub.f32 0.0, %v213_v63  ;;  %v631_v12 = vpop.f32.mrb[2].mxu1 }
 0x254   :  { %v237_v13 = vmul.f32 1.442695, %v232_v7  ;;  %v228_v16 = vadd.f32 %v631_v12, %v887_v3  ;;  %v222_v20 = vpop.f32.mrb[3].mxu1 }
 0x255   :  { %v235_v24 = vmul.f32 1.442695, %v231_v11  ;;  %v223_v25 = vadd.f32 %v222_v20, %v892_v10 }
 0x256   :  { %671 = vpow2.f32 %v237_v13  ;;  %v234_v27 = vsub.f32 0.0, %v228_v16 }
 0x257   :  { %673 = vpow2.f32 %v235_v24  ;;  %v233_v28 = vsub.f32 0.0, %v223_v25  ;;  %v387_v29 = vpop.f32.mrb[4].mxu1 }
 0x258   :  { %v241_v30 = vmul.f32 1.442695, %v234_v27  ;;  %v388_v31 = vadd.f32 %v387_v29, %v317_v26  ;;  %v642_v32 = vpop.f32.mrb[5].mxu1 }
 0x259   :  { %v239_v33 = vmul.f32 1.442695, %v233_v28 }
 0x25a   :  { %675 = vpow2.f32 %v241_v30  ;;  %v391_v34 = vmax.f32 %v388_v31, 0.0 }
 0x25b   :  { %677 = vpow2.f32 %v239_v33 }
 0x25c   :  { %643 = vmatprep.subr.msk.mxu0 %vm142_vm3, %v391_v34  ;;  %663 = vmatprep.subr.msk.mxu1 %vm142_vm3, %v391_v34 }
 0x25d   :  { %644 = vmatpush3.msk.msra.mxu0 %vm142_vm3, %v391_v34  ;;  %664 = vmatpush3.msk.msra.mxu1 %vm142_vm3, %v391_v34 }
 0x25e   :  { %646 = vmatmul.mubr.msk.f32.vlgmr.msra.gmra.mrb[2].mxu0 %vm129_vm2, %v122_v51  ;;  %649 = vmatmul.mubr.msk.f32.vlgmr.msra.gmra.mrb[6].mxu1 %vm129_vm2, %v124_v55 }
 0x260   :  { %v672_v35 = vpop.eup %671 }
 0x261   :  { %v674_v36 = vpop.eup %673  ;;  %v244_v37 = vadd.f32 1.0, %v672_v35 }
 0x262   :  { %v243_v38 = vadd.f32 1.0, %v674_v36 }
 0x263   :  { %679 = vrcp.f32 %v244_v37 }
 0x264   :  { %v676_v39 = vpop.eup %675  ;;  %681 = vrcp.f32 %v243_v38 }
 0x265   :  { %v678_v40 = vpop.eup %677  ;;  %v246_v41 = vadd.f32 1.0, %v676_v39 }
 0x266   :  { %v245_v42 = vadd.f32 1.0, %v678_v40 }
 0x267   :  { %683 = vrcp.f32 %v246_v41 }
 0x268   :  { %685 = vrcp.f32 %v245_v42 }
 0x26d   :  { %v680_v43 = vpop.eup %679 }
 0x26e   :  { %v682_v44 = vpop.eup %681  ;;  %262 = vperm.xlu1 %670, %v680_v43  }
 0x26f   :  { %257 = vperm.xlu0 %669, %v682_v44  }
 0x271   :  { %v684_v45 = vpop.eup %683 }
 0x272   :  { %272 = vperm.xlu1 %670, %v684_v45   ;;  %v686_v46 = vpop.eup %685 }
 0x276   :  { %267 = vperm.xlu1 %670, %v686_v46  }
 0x2ed   :  { %v263_v47 = vpop.permute.xlu1 %262 }
 0x2ee   :  { %v277_v48 = vmul.f32 %v263_v47, %v774_v8  ;;  %v278_v49 = vmul.f32 %v263_v47, %v779_v9  ;;  %v258_v50 = vpop.permute.xlu0 %257 }
 0x2ef   :  { %v275_v51 = vmul.f32 %v258_v50, %v750_v2  ;;  %v276_v52 = vmul.f32 %v258_v50, %v757_v4 }
 0x2f0   :  { %285 = vst [vmem:[%s978_s5 + $0x10] sm:$0xff] %v277_v48  ;;  %286 = vst [vmem:[%s978_s5 + $0x18] sm:$0xff] %v278_v49 }
 0x2f1   :  { %283 = vst [vmem:[%s978_s5] sm:$0xff] %v275_v51  ;;  %284 = vst [vmem:[%s978_s5 + $0x8] sm:$0xff] %v276_v52  ;;  %v273_v8 = vpop.permute.xlu1 %272 }
 0x2f2   :  { %v281_v2 = vmul.f32 %v273_v8, %v762_v5  ;;  %v282_v4 = vmul.f32 %v273_v8, %v767_v6 }
 0x2f4   :  { %289 = vst [vmem:[%s978_s5 + $0x30] sm:$0xff] %v281_v2  ;;  %290 = vst [vmem:[%s978_s5 + $0x38] sm:$0xff] %v282_v4 }
 0x2f5   :  { %v268_v9 = vpop.permute.xlu1 %267 }
 0x2f6   :  { %v279_v53 = vmul.f32 %v268_v9, %v740_v0  ;;  %v280_v54 = vmul.f32 %v268_v9, %v745_v1 }
 0x2f8   :  { %287 = vst [vmem:[%s978_s5 + $0x20] sm:$0xff] %v279_v53  ;;  %288 = vst [vmem:[%s978_s5 + $0x28] sm:$0xff] %v280_v54 }
 0x331   :  { %v647_v5 = vpop.f32.mrb[2].mxu0  ;;  %v650_v6 = vpop.f32.mrb[6].mxu1 }
 0x332   :  { %v487_v55 = vadd.f32 %v647_v5, %v875_v58  ;;  %v481_v56 = vpop.f32.mrb[3].mxu0  ;;  %v491_v57 = vpop.f32.mrb[7].mxu1  ;;  %v497_v1 = vadd.f32 %v650_v6, %v887_v3 }
 0x333   :  { %v482_v60 = vadd.f32 %v481_v56, %v880_v59  ;;  %v492_v0 = vadd.f32 %v491_v57, %v892_v10 }
 0x334   :  { %v501_v61 = vsub.f32 0.0, %v487_v55  ;;  %v503_v13 = vsub.f32 0.0, %v497_v1 }
 0x335   :  { %v500_v62 = vsub.f32 0.0, %v482_v60  ;;  %v502_v63 = vsub.f32 0.0, %v492_v0 }
 0x336   :  { %v506_v7 = vmul.f32 1.442695, %v501_v61  ;;  %v510_v16 = vmul.f32 1.442695, %v503_v13 }
 0x337   :  { %v504_v11 = vmul.f32 1.442695, %v500_v62  ;;  %v508_v12 = vmul.f32 1.442695, %v502_v63 }
 0x338   :  { %687 = vpow2.f32 %v506_v7 }
 0x339   :  { %689 = vpow2.f32 %v504_v11 }
 0x33a   :  { %691 = vpow2.f32 %v508_v12 }
 0x33b   :  { %693 = vpow2.f32 %v510_v16 }
 0x342   :  { %v688_v58 = vpop.eup %687 }
 0x343   :  { %v690_v20 = vpop.eup %689  ;;  %v513_v24 = vadd.f32 1.0, %v688_v58 }
 0x344   :  { %v692_v59 = vpop.eup %691  ;;  %v512_v10 = vadd.f32 1.0, %v690_v20 }
 0x345   :  { %695 = vrcp.f32 %v513_v24  ;;  %v514_v25 = vadd.f32 1.0, %v692_v59  ;;  %v694_v3 = vpop.eup %693 }
 0x346   :  { %697 = vrcp.f32 %v512_v10  ;;  %v515_v26 = vadd.f32 1.0, %v694_v3 }
 0x347   :  { %699 = vrcp.f32 %v514_v25 }
 0x348   :  { %701 = vrcp.f32 %v515_v26 }
 0x34f   :  { %v696_v27 = vpop.eup %695 }
 0x350   :  { %531 = vperm.xlu1 %670, %v696_v27   ;;  %v698_v28 = vpop.eup %697 }
 0x351   :  { %v700_v29 = vpop.eup %699 }
 0x352   :  { %v702_v30 = vpop.eup %701 }
 0x354   :  { %526 = vperm.xlu1 %670, %v698_v28  }
 0x358   :  { %536 = vperm.xlu1 %670, %v700_v29  }
 0x35c   :  { %541 = vperm.xlu1 %670, %v702_v30  }
 0x3cf   :  { %v532_v31 = vpop.permute.xlu1 %531 }
 0x3d0   :  { %v546_v32 = vmul.f32 %v791_v14, %v532_v31  ;;  %v547_v33 = vmul.f32 %v796_v15, %v532_v31 }
 0x3d2   :  { %587 = vst [vmem:[%s978_s5 + $0x50] sm:$0xff] %v546_v32  ;;  %588 = vst [vmem:[%s978_s5 + $0x58] sm:$0xff] %v547_v33 }
 0x3d3   :  { %v527_v34 = vpop.permute.xlu1 %526 }
 0x3d4   :  { %v544_v35 = vmul.f32 %v803_v17, %v527_v34  ;;  %v545_v36 = vmul.f32 %v808_v18, %v527_v34 }
 0x3d6   :  { %585 = vst [vmem:[%s978_s5 + $0x40] sm:$0xff] %v544_v35  ;;  %586 = vst [vmem:[%s978_s5 + $0x48] sm:$0xff] %v545_v36 }
 0x3d7   :  { %v537_v14 = vpop.permute.xlu1 %536 }
 0x3d8   :  { %v548_v15 = vmul.f32 %v825_v22, %v537_v14  ;;  %v549_v37 = vmul.f32 %v830_v23, %v537_v14 }
 0x3da   :  { %589 = vst [vmem:[%s978_s5 + $0x60] sm:$0xff] %v548_v15  ;;  %590 = vst [vmem:[%s978_s5 + $0x68] sm:$0xff] %v549_v37 }
 0x3db   :  { %v542_v17 = vpop.permute.xlu1 %541 }
 0x3dc   :  { %v550_v18 = vmul.f32 %v813_v19, %v542_v17  ;;  %v551_v38 = vmul.f32 %v820_v21, %v542_v17 }
 0x3de   :  { %591 = vst [vmem:[%s978_s5 + $0x70] sm:$0xff] %v550_v18  ;;  %592 = vst [vmem:[%s978_s5 + $0x78] sm:$0xff] %v551_v38 }

</bundles_post_ra>
